<compile_context>
chip_gen: v7x
topology: tpu7x:2x2x1
jax: 0.10.0
libtpu: 0.0.40
codegen_flags: <defaults>
</compile_context>

<pallas_src>
import functools

import jax
import jax.numpy as jnp
import numpy as np
from jax import lax
from jax.experimental import pallas as pl
from jax.experimental.pallas import tpu as pltpu


# ---------------------------------------------------------------------------
# Pallas kernel: per-corner complex channel contraction over retained modes.
# ---------------------------------------------------------------------------

_UNROLL_CIN = 16   # fully unroll the Cin MAC loop up to this many channels


def _spectral_mac_kernel(xr_ref, xi_ref, wr_ref, wi_ref, or_ref, oi_ref):
    """One (corner, mode-tile) grid step.

    xr/xi : (B,   Cin,  TM)  real / imag of the x_ft corner (batch folded in)
    wr/wi : (Cin, Cout, TM)  real / imag of this corner's weights
    or/oi : (B,   Cout, TM)  result

    TM is a multiple of 128, so all loads/stores are lane-dense.  The Cin
    reduction is a pure VPU multiply-accumulate with f32 accumulators.
    """
    cin = xr_ref.shape[1]

    def mac(i, acc_r, acc_i):
        # 3-D slices keep everything >=2-D tiled (no 1-D row + [None, :]
        # relayout); the (B,1,TM) x (1,Cout,TM) product is a sublane / slab
        # broadcast handled in the load/mul path.
        xr = xr_ref[:, pl.ds(i, 1), :].astype(jnp.float32)   # (B, 1, TM)
        xi = xi_ref[:, pl.ds(i, 1), :].astype(jnp.float32)
        wr = wr_ref[pl.ds(i, 1), :, :].astype(jnp.float32)   # (1, Cout, TM)
        wi = wi_ref[pl.ds(i, 1), :, :].astype(jnp.float32)
        acc_r = acc_r + xr * wr - xi * wi
        acc_i = acc_i + xi * wr + xr * wi
        return acc_r, acc_i

    acc_r = jnp.zeros(or_ref.shape, jnp.float32)
    acc_i = jnp.zeros(oi_ref.shape, jnp.float32)

    if cin <= _UNROLL_CIN:
        for i in range(cin):                      # small, static -> full unroll
            acc_r, acc_i = mac(i, acc_r, acc_i)
    else:
        # Large Cin: bounded unroll keeps vreg live ranges short (spill safety).
        def body(i, carry):
            return mac(i, *carry)
        acc_r, acc_i = lax.fori_loop(0, cin, body, (acc_r, acc_i), unroll=4)

    or_ref[...] = acc_r
    oi_ref[...] = acc_i


def _pick_m_tile(mp, b, cin, cout, budget_bytes=8 * 1024 * 1024):
    """Largest multiple-of-128 mode tile whose per-step blocks — (x, w, out) x
    (real, imag) x double-buffering — fit a conservative VMEM budget, so the
    tiling also fits v7x's 64 MiB VMEM at production sizes.  (For very large
    Cin*Cout one would additionally tile Cout; not needed at these widths.)"""
    per_col = 4 * 2 * 2 * (b * cin + cin * cout + b * cout)   # f32 bytes / mode column
    for tm in (mp, 4096, 2048, 1024, 512, 256, 128):
        if tm <= mp and mp % tm == 0 and per_col * tm <= budget_bytes:
            return tm
    return 128


def _spectral_corner_contract(xr, xi, wr, wi):
    """xr, xi: (4, B, Cin, Mp); wr, wi: (4, Cin, Cout, Mp) -> 2 x (4, B, Cout, Mp) f32."""
    ncorner, B, Cin, Mp = xr.shape
    Cout = wr.shape[2]
    TM = _pick_m_tile(Mp, B, Cin, Cout)

    x_spec = pl.BlockSpec((None, B, Cin, TM), lambda c, m: (c, 0, 0, m))
    w_spec = pl.BlockSpec((None, Cin, Cout, TM), lambda c, m: (c, 0, 0, m))
    o_spec = pl.BlockSpec((None, B, Cout, TM), lambda c, m: (c, 0, 0, m))

    return pl.pallas_call(
        _spectral_mac_kernel,
        out_shape=(
            jax.ShapeDtypeStruct((ncorner, B, Cout, Mp), jnp.float32),
            jax.ShapeDtypeStruct((ncorner, B, Cout, Mp), jnp.float32),
        ),
        grid=(ncorner, Mp // TM),
        in_specs=[x_spec, x_spec, w_spec, w_spec],
        out_specs=(o_spec, o_spec),
        compiler_params=pltpu.CompilerParams(
            dimension_semantics=("parallel", "parallel"),
            vmem_limit_bytes=48 * 1024 * 1024,
        ),
    )(xr, xi, wr, wi)


# ---------------------------------------------------------------------------
# SpectralConv3d_fast forward (FFT glue + Pallas contraction).
# ---------------------------------------------------------------------------

def spectral_conv3d_fast(x, w1, w2, w3, w4, modes1, modes2, modes3,
                         param_dtype=jnp.float32):
    """x: (B, Cin, D1, D2, D3) f32; w*: (Cin, Cout, m1, m2, m3, 2) f32.

    Set param_dtype=jnp.bfloat16 on v6e/v7x production sizes to halve weight /
    x_ft DMA traffic; the kernel accumulates in f32 either way.
    """
    B, Cin, D1, D2, D3 = x.shape
    Cout = w1.shape[1]
    m1, m2, m3 = modes1, modes2, modes3
    M = m1 * m2 * m3

    # torch.rfft(x, 3, normalized=True, onesided=True)
    x_ft = jnp.fft.rfftn(x.astype(jnp.float32), axes=(-3, -2, -1), norm="ortho")

    corners = jnp.stack(
        [
            x_ft[:, :, :m1, :m2, :m3],
            x_ft[:, :, -m1:, :m2, :m3],
            x_ft[:, :, :m1, -m2:, :m3],
            x_ft[:, :, -m1:, -m2:, :m3],
        ],
        axis=0,
    )                                                     # (4, B, Cin, m1, m2, m3) c64

    xr = jnp.real(corners).reshape(4, B, Cin, M)
    xi = jnp.imag(corners).reshape(4, B, Cin, M)
    w = jnp.stack([w1, w2, w3, w4], axis=0)               # (4, Cin, Cout, m1, m2, m3, 2)
    wr = w[..., 0].reshape(4, Cin, Cout, M)
    wi = w[..., 1].reshape(4, Cin, Cout, M)

    # Lane-pad the flattened mode axis to a multiple of 128 (lane-dense stores).
    Mp = ((M + 127) // 128) * 128
    if Mp != M:
        padcfg = ((0, 0), (0, 0), (0, 0), (0, Mp - M))
        xr = jnp.pad(xr, padcfg)
        xi = jnp.pad(xi, padcfg)
        wr = jnp.pad(wr, padcfg)
        wi = jnp.pad(wi, padcfg)

    xr = xr.astype(param_dtype)
    xi = xi.astype(param_dtype)
    wr = wr.astype(param_dtype)
    wi = wi.astype(param_dtype)

    out_r, out_i = _spectral_corner_contract(xr, xi, wr, wi)     # (4, B, Cout, Mp) f32
    out_c = lax.complex(out_r[..., :M], out_i[..., :M]).reshape(4, B, Cout, m1, m2, m3)

    # Scatter the 4 retained-mode corners into the (otherwise zero) spectrum.
    # Only the first m3 bins along the last axis are non-zero, so scatter into a
    # trimmed slab and zero-pad the remaining bins once.
    D3h = D3 // 2 + 1
    out_small = jnp.zeros((B, Cout, D1, D2, m3), dtype=jnp.complex64)
    out_small = out_small.at[:, :, :m1, :m2, :].set(out_c[0])
    out_small = out_small.at[:, :, -m1:, :m2, :].set(out_c[1])
    out_small = out_small.at[:, :, :m1, -m2:, :].set(out_c[2])
    out_small = out_small.at[:, :, -m1:, -m2:, :].set(out_c[3])
    out_ft = jnp.pad(out_small, ((0, 0), (0, 0), (0, 0), (0, 0), (0, D3h - m3)))

    # torch.irfft(out_ft, 3, normalized=True, onesided=True, signal_sizes=(D1,D2,D3))
    return jnp.fft.irfftn(out_ft, s=(D1, D2, D3), axes=(-3, -2, -1),
                          norm="ortho").astype(jnp.float32)


def _spectral_conv3d_reference(x, w1, w2, w3, w4, modes1, modes2, modes3):
    """Pure-JAX reference mirroring the PyTorch SpectralConv3d_fast forward."""
    B, Cin, D1, D2, D3 = x.shape
    Cout = w1.shape[1]
    m1, m2, m3 = modes1, modes2, modes3
    x_ft = jnp.fft.rfftn(x, axes=(-3, -2, -1), norm="ortho")

    def cmul(a, w):
        wc = lax.complex(w[..., 0], w[..., 1]).astype(jnp.complex64)
        return jnp.einsum("bixyz,ioxyz->boxyz", a, wc)

    out_ft = jnp.zeros((B, Cout, D1, D2, D3 // 2 + 1), dtype=jnp.complex64)
    out_ft = out_ft.at[:, :, :m1, :m2, :m3].set(cmul(x_ft[:, :, :m1, :m2, :m3], w1))
    out_ft = out_ft.at[:, :, -m1:, :m2, :m3].set(cmul(x_ft[:, :, -m1:, :m2, :m3], w2))
    out_ft = out_ft.at[:, :, :m1, -m2:, :m3].set(cmul(x_ft[:, :, :m1, -m2:, :m3], w3))
    out_ft = out_ft.at[:, :, -m1:, -m2:, :m3].set(cmul(x_ft[:, :, -m1:, -m2:, :m3], w4))
    return jnp.fft.irfftn(out_ft, s=(D1, D2, D3), axes=(-3, -2, -1),
                          norm="ortho").astype(jnp.float32)


# ---------------------------------------------------------------------------
# SimpleBlock3d forward (fc0 -> 4 x [spectral + 1x1 conv + BN (+relu)] -> fc1/fc2).
# ---------------------------------------------------------------------------

def _batchnorm3d_train(v, gamma, beta, eps=1e-5):
    """BatchNorm3d in training mode (batch statistics, biased variance)."""
    mean = jnp.mean(v, axis=(0, 2, 3, 4), keepdims=True)
    var = jnp.mean(jnp.square(v - mean), axis=(0, 2, 3, 4), keepdims=True)
    vhat = (v - mean) * lax.rsqrt(var + eps)
    return gamma[None, :, None, None, None] * vhat + beta[None, :, None, None, None]


def simple_block3d_forward(params, x, m1, m2, m3, spectral_fn):
    """x: (B, X, Y, T, 3) -> (B, X, Y, T, 1), matching SimpleBlock3d.forward."""
    fc0_w, fc0_b = params["fc0"]
    h = jnp.einsum("bxyzc,wc->bxyzw", x, fc0_w) + fc0_b
    h = jnp.transpose(h, (0, 4, 1, 2, 3))                 # (B, width, X, Y, T)

    for l in range(4):
        w1, w2, w3, w4 = params[f"conv{l}"]
        x1 = spectral_fn(h, w1, w2, w3, w4, m1, m2, m3)
        cw, cb = params[f"w{l}"]                           # 1x1 Conv1d over channels
        x2 = jnp.einsum("oc,bcxyz->boxyz", cw, h) + cb[None, :, None, None, None]
        g, bta = params[f"bn{l}"]
        h = _batchnorm3d_train(x1 + x2, g, bta)
        if l < 3:                                          # no relu after bn3
            h = jax.nn.relu(h)

    h = jnp.transpose(h, (0, 2, 3, 4, 1))                  # (B, X, Y, T, width)
    fc1_w, fc1_b = params["fc1"]
    h = jax.nn.relu(jnp.einsum("bxyzw,hw->bxyzh", h, fc1_w) + fc1_b)
    fc2_w, fc2_b = params["fc2"]
    return jnp.einsum("bxyzh,oh->bxyzo", h, fc2_w) + fc2_b


def _init_params(key, width, m1, m2, m3):
    keys = iter(jax.random.split(key, 32))
    nk = lambda: next(keys)
    scale = 1.0 / (width * width)
    wshape = (width, width, m1, m2, m3, 2)
    p = {}
    p["fc0"] = (0.5 * jax.random.normal(nk(), (width, 3), jnp.float32),
                0.1 * jax.random.normal(nk(), (width,), jnp.float32))
    for l in range(4):
        p[f"conv{l}"] = tuple(
            scale * jax.random.uniform(nk(), wshape, dtype=jnp.float32) for _ in range(4))
        p[f"w{l}"] = ((1.0 / np.sqrt(width)) * jax.random.normal(nk(), (width, width), jnp.float32),
                      0.1 * jax.random.normal(nk(), (width,), jnp.float32))
        p[f"bn{l}"] = (jnp.ones((width,), jnp.float32), jnp.zeros((width,), jnp.float32))
    p["fc1"] = ((1.0 / np.sqrt(width)) * jax.random.normal(nk(), (128, width), jnp.float32),
                0.1 * jax.random.normal(nk(), (128,), jnp.float32))
    p["fc2"] = ((1.0 / np.sqrt(128.0)) * jax.random.normal(nk(), (1, 128), jnp.float32),
                0.1 * jax.random.normal(nk(), (1,), jnp.float32))
    return p


if __name__ == "__main__":
    # Small deterministic problem: batch=2, 16x16x8 grid, width=8, modes (4,4,3).
    B, sx, sy, sz = 2, 16, 16, 8
    width = 8
    m1, m2, m3 = 4, 4, 3

    key = jax.random.PRNGKey(0)
    kx, kp, kh = jax.random.split(key, 3)
    x = jax.random.normal(kx, (B, sx, sy, sz, 3), dtype=jnp.float32)
    params = _init_params(kp, width, m1, m2, m3)

    # 1) Isolated check of the Pallas spectral layer against the einsum reference.
    h = jax.random.normal(kh, (B, width, sx, sy, sz), dtype=jnp.float32)
    w1, w2, w3, w4 = params["conv0"]
    spec_f32 = jax.jit(functools.partial(
        spectral_conv3d_fast, modes1=m1, modes2=m2, modes3=m3))
    got = jax.block_until_ready(spec_f32(h, w1, w2, w3, w4))
    want = _spectral_conv3d_reference(h, w1, w2, w3, w4, m1, m2, m3)
    np.testing.assert_allclose(np.asarray(got), np.asarray(want), rtol=1e-4, atol=1e-5)

    # 1b) Smoke-test the bf16-streaming path (mem-bound production config).
    spec_bf16 = jax.jit(functools.partial(
        spectral_conv3d_fast, modes1=m1, modes2=m2, modes3=m3,
        param_dtype=jnp.bfloat16))
    got_bf16 = jax.block_until_ready(spec_bf16(h, w1, w2, w3, w4))
    np.testing.assert_allclose(np.asarray(got_bf16), np.asarray(want), rtol=5e-2, atol=1e-2)

    # 2) Full SimpleBlock3d forward with the Pallas spectral layers.
    fwd = jax.jit(functools.partial(
        simple_block3d_forward, m1=m1, m2=m2, m3=m3, spectral_fn=spectral_conv3d_fast))
    out = jax.block_until_ready(fwd(params, x))

    ref = simple_block3d_forward(params, x, m1, m2, m3, _spectral_conv3d_reference)
    np.testing.assert_allclose(np.asarray(out), np.asarray(ref), rtol=1e-3, atol=1e-4)

    print("KERNEL_OK")
</pallas_src>

<mosaic_0001>
module attributes {stable_mosaic.version = 11 : i64} {
  func.func @_spectral_mac_kernel(%arg0: i32, %arg1: i32, %arg2: memref<1x2x8x128xf32, #tpu.memory_space<vmem>>, %arg3: memref<1x2x8x128xf32, #tpu.memory_space<vmem>>, %arg4: memref<1x8x8x128xf32, #tpu.memory_space<vmem>>, %arg5: memref<1x8x8x128xf32, #tpu.memory_space<vmem>>, %arg6: memref<1x2x8x128xf32, #tpu.memory_space<vmem>>, %arg7: memref<1x2x8x128xf32, #tpu.memory_space<vmem>>) attributes {dimension_semantics = [#tpu.dimension_semantics<parallel>, #tpu.dimension_semantics<parallel>], iteration_bounds = array<i64: 4, 1>, scalar_prefetch = 0 : i64, scratch_operands = 0 : i64, tpu.core_type = #tpu.core_type<tc>, window_params = [{transform_indices = @transform_0, window_bounds = array<i64: 1, 2, 8, 128>}, {transform_indices = @transform_1, window_bounds = array<i64: 1, 2, 8, 128>}, {transform_indices = @transform_2, window_bounds = array<i64: 1, 8, 8, 128>}, {transform_indices = @transform_3, window_bounds = array<i64: 1, 8, 8, 128>}, {transform_indices = @transform_4, window_bounds = array<i64: 1, 2, 8, 128>}, {transform_indices = @transform_5, window_bounds = array<i64: 1, 2, 8, 128>}]} {
    %cst = arith.constant 0.000000e+00 : f32
    %0 = vector.broadcast %cst : f32 to vector<2x8x128xf32>
    %cst_0 = arith.constant 0.000000e+00 : f32
    %1 = vector.broadcast %cst_0 : f32 to vector<2x8x128xf32>
    %c0 = arith.constant 0 : index
    %c0_1 = arith.constant 0 : index
    %c0_2 = arith.constant 0 : index
    %c0_3 = arith.constant 0 : index
    %2 = vector.load %arg2[%c0, %c0_1, %c0_2, %c0_3] : memref<1x2x8x128xf32, #tpu.memory_space<vmem>>, vector<1x2x1x128xf32>
    %3 = vector.shape_cast %2 : vector<1x2x1x128xf32> to vector<2x1x128xf32>
    %c0_4 = arith.constant 0 : index
    %c0_5 = arith.constant 0 : index
    %c0_6 = arith.constant 0 : index
    %c0_7 = arith.constant 0 : index
    %4 = vector.load %arg3[%c0_4, %c0_5, %c0_6, %c0_7] : memref<1x2x8x128xf32, #tpu.memory_space<vmem>>, vector<1x2x1x128xf32>
    %5 = vector.shape_cast %4 : vector<1x2x1x128xf32> to vector<2x1x128xf32>
    %c0_8 = arith.constant 0 : index
    %c0_9 = arith.constant 0 : index
    %c0_10 = arith.constant 0 : index
    %c0_11 = arith.constant 0 : index
    %6 = vector.load %arg4[%c0_8, %c0_9, %c0_10, %c0_11] : memref<1x8x8x128xf32, #tpu.memory_space<vmem>>, vector<1x1x8x128xf32>
    %7 = vector.shape_cast %6 : vector<1x1x8x128xf32> to vector<1x8x128xf32>
    %c0_12 = arith.constant 0 : index
    %c0_13 = arith.constant 0 : index
    %c0_14 = arith.constant 0 : index
    %c0_15 = arith.constant 0 : index
    %8 = vector.load %arg5[%c0_12, %c0_13, %c0_14, %c0_15] : memref<1x8x8x128xf32, #tpu.memory_space<vmem>>, vector<1x1x8x128xf32>
    %9 = vector.shape_cast %8 : vector<1x1x8x128xf32> to vector<1x8x128xf32>
    %10 = vector.broadcast %3 : vector<2x1x128xf32> to vector<2x8x128xf32>
    %11 = vector.broadcast %7 : vector<1x8x128xf32> to vector<2x8x128xf32>
    %12 = arith.mulf %10, %11 : vector<2x8x128xf32>
    %13 = arith.addf %0, %12 : vector<2x8x128xf32>
    %14 = vector.broadcast %5 : vector<2x1x128xf32> to vector<2x8x128xf32>
    %15 = vector.broadcast %9 : vector<1x8x128xf32> to vector<2x8x128xf32>
    %16 = arith.mulf %14, %15 : vector<2x8x128xf32>
    %17 = arith.subf %13, %16 : vector<2x8x128xf32>
    %18 = vector.broadcast %5 : vector<2x1x128xf32> to vector<2x8x128xf32>
    %19 = vector.broadcast %7 : vector<1x8x128xf32> to vector<2x8x128xf32>
    %20 = arith.mulf %18, %19 : vector<2x8x128xf32>
    %21 = arith.addf %1, %20 : vector<2x8x128xf32>
    %22 = vector.broadcast %3 : vector<2x1x128xf32> to vector<2x8x128xf32>
    %23 = vector.broadcast %9 : vector<1x8x128xf32> to vector<2x8x128xf32>
    %24 = arith.mulf %22, %23 : vector<2x8x128xf32>
    %25 = arith.addf %21, %24 : vector<2x8x128xf32>
    %c0_16 = arith.constant 0 : index
    %c0_17 = arith.constant 0 : index
    %c1 = arith.constant 1 : index
    %c0_18 = arith.constant 0 : index
    %26 = vector.load %arg2[%c0_16, %c0_17, %c1, %c0_18] : memref<1x2x8x128xf32, #tpu.memory_space<vmem>>, vector<1x2x1x128xf32>
    %27 = vector.shape_cast %26 : vector<1x2x1x128xf32> to vector<2x1x128xf32>
    %c0_19 = arith.constant 0 : index
    %c0_20 = arith.constant 0 : index
    %c1_21 = arith.constant 1 : index
    %c0_22 = arith.constant 0 : index
    %28 = vector.load %arg3[%c0_19, %c0_20, %c1_21, %c0_22] : memref<1x2x8x128xf32, #tpu.memory_space<vmem>>, vector<1x2x1x128xf32>
    %29 = vector.shape_cast %28 : vector<1x2x1x128xf32> to vector<2x1x128xf32>
    %c0_23 = arith.constant 0 : index
    %c1_24 = arith.constant 1 : index
    %c0_25 = arith.constant 0 : index
    %c0_26 = arith.constant 0 : index
    %30 = vector.load %arg4[%c0_23, %c1_24, %c0_25, %c0_26] : memref<1x8x8x128xf32, #tpu.memory_space<vmem>>, vector<1x1x8x128xf32>
    %31 = vector.shape_cast %30 : vector<1x1x8x128xf32> to vector<1x8x128xf32>
    %c0_27 = arith.constant 0 : index
    %c1_28 = arith.constant 1 : index
    %c0_29 = arith.constant 0 : index
    %c0_30 = arith.constant 0 : index
    %32 = vector.load %arg5[%c0_27, %c1_28, %c0_29, %c0_30] : memref<1x8x8x128xf32, #tpu.memory_space<vmem>>, vector<1x1x8x128xf32>
    %33 = vector.shape_cast %32 : vector<1x1x8x128xf32> to vector<1x8x128xf32>
    %34 = vector.broadcast %27 : vector<2x1x128xf32> to vector<2x8x128xf32>
    %35 = vector.broadcast %31 : vector<1x8x128xf32> to vector<2x8x128xf32>
    %36 = arith.mulf %34, %35 : vector<2x8x128xf32>
    %37 = arith.addf %17, %36 : vector<2x8x128xf32>
    %38 = vector.broadcast %29 : vector<2x1x128xf32> to vector<2x8x128xf32>
    %39 = vector.broadcast %33 : vector<1x8x128xf32> to vector<2x8x128xf32>
    %40 = arith.mulf %38, %39 : vector<2x8x128xf32>
    %41 = arith.subf %37, %40 : vector<2x8x128xf32>
    %42 = vector.broadcast %29 : vector<2x1x128xf32> to vector<2x8x128xf32>
    %43 = vector.broadcast %31 : vector<1x8x128xf32> to vector<2x8x128xf32>
    %44 = arith.mulf %42, %43 : vector<2x8x128xf32>
    %45 = arith.addf %25, %44 : vector<2x8x128xf32>
    %46 = vector.broadcast %27 : vector<2x1x128xf32> to vector<2x8x128xf32>
    %47 = vector.broadcast %33 : vector<1x8x128xf32> to vector<2x8x128xf32>
    %48 = arith.mulf %46, %47 : vector<2x8x128xf32>
    %49 = arith.addf %45, %48 : vector<2x8x128xf32>
    %c0_31 = arith.constant 0 : index
    %c0_32 = arith.constant 0 : index
    %c2 = arith.constant 2 : index
    %c0_33 = arith.constant 0 : index
    %50 = vector.load %arg2[%c0_31, %c0_32, %c2, %c0_33] : memref<1x2x8x128xf32, #tpu.memory_space<vmem>>, vector<1x2x1x128xf32>
    %51 = vector.shape_cast %50 : vector<1x2x1x128xf32> to vector<2x1x128xf32>
    %c0_34 = arith.constant 0 : index
    %c0_35 = arith.constant 0 : index
    %c2_36 = arith.constant 2 : index
    %c0_37 = arith.constant 0 : index
    %52 = vector.load %arg3[%c0_34, %c0_35, %c2_36, %c0_37] : memref<1x2x8x128xf32, #tpu.memory_space<vmem>>, vector<1x2x1x128xf32>
    %53 = vector.shape_cast %52 : vector<1x2x1x128xf32> to vector<2x1x128xf32>
    %c0_38 = arith.constant 0 : index
    %c2_39 = arith.constant 2 : index
    %c0_40 = arith.constant 0 : index
    %c0_41 = arith.constant 0 : index
    %54 = vector.load %arg4[%c0_38, %c2_39, %c0_40, %c0_41] : memref<1x8x8x128xf32, #tpu.memory_space<vmem>>, vector<1x1x8x128xf32>
    %55 = vector.shape_cast %54 : vector<1x1x8x128xf32> to vector<1x8x128xf32>
    %c0_42 = arith.constant 0 : index
    %c2_43 = arith.constant 2 : index
    %c0_44 = arith.constant 0 : index
    %c0_45 = arith.constant 0 : index
    %56 = vector.load %arg5[%c0_42, %c2_43, %c0_44, %c0_45] : memref<1x8x8x128xf32, #tpu.memory_space<vmem>>, vector<1x1x8x128xf32>
    %57 = vector.shape_cast %56 : vector<1x1x8x128xf32> to vector<1x8x128xf32>
    %58 = vector.broadcast %51 : vector<2x1x128xf32> to vector<2x8x128xf32>
    %59 = vector.broadcast %55 : vector<1x8x128xf32> to vector<2x8x128xf32>
    %60 = arith.mulf %58, %59 : vector<2x8x128xf32>
    %61 = arith.addf %41, %60 : vector<2x8x128xf32>
    %62 = vector.broadcast %53 : vector<2x1x128xf32> to vector<2x8x128xf32>
    %63 = vector.broadcast %57 : vector<1x8x128xf32> to vector<2x8x128xf32>
    %64 = arith.mulf %62, %63 : vector<2x8x128xf32>
    %65 = arith.subf %61, %64 : vector<2x8x128xf32>
    %66 = vector.broadcast %53 : vector<2x1x128xf32> to vector<2x8x128xf32>
    %67 = vector.broadcast %55 : vector<1x8x128xf32> to vector<2x8x128xf32>
    %68 = arith.mulf %66, %67 : vector<2x8x128xf32>
    %69 = arith.addf %49, %68 : vector<2x8x128xf32>
    %70 = vector.broadcast %51 : vector<2x1x128xf32> to vector<2x8x128xf32>
    %71 = vector.broadcast %57 : vector<1x8x128xf32> to vector<2x8x128xf32>
    %72 = arith.mulf %70, %71 : vector<2x8x128xf32>
    %73 = arith.addf %69, %72 : vector<2x8x128xf32>
    %c0_46 = arith.constant 0 : index
    %c0_47 = arith.constant 0 : index
    %c3 = arith.constant 3 : index
    %c0_48 = arith.constant 0 : index
    %74 = vector.load %arg2[%c0_46, %c0_47, %c3, %c0_48] : memref<1x2x8x128xf32, #tpu.memory_space<vmem>>, vector<1x2x1x128xf32>
    %75 = vector.shape_cast %74 : vector<1x2x1x128xf32> to vector<2x1x128xf32>
    %c0_49 = arith.constant 0 : index
    %c0_50 = arith.constant 0 : index
    %c3_51 = arith.constant 3 : index
    %c0_52 = arith.constant 0 : index
    %76 = vector.load %arg3[%c0_49, %c0_50, %c3_51, %c0_52] : memref<1x2x8x128xf32, #tpu.memory_space<vmem>>, vector<1x2x1x128xf32>
    %77 = vector.shape_cast %76 : vector<1x2x1x128xf32> to vector<2x1x128xf32>
    %c0_53 = arith.constant 0 : index
    %c3_54 = arith.constant 3 : index
    %c0_55 = arith.constant 0 : index
    %c0_56 = arith.constant 0 : index
    %78 = vector.load %arg4[%c0_53, %c3_54, %c0_55, %c0_56] : memref<1x8x8x128xf32, #tpu.memory_space<vmem>>, vector<1x1x8x128xf32>
    %79 = vector.shape_cast %78 : vector<1x1x8x128xf32> to vector<1x8x128xf32>
    %c0_57 = arith.constant 0 : index
    %c3_58 = arith.constant 3 : index
    %c0_59 = arith.constant 0 : index
    %c0_60 = arith.constant 0 : index
    %80 = vector.load %arg5[%c0_57, %c3_58, %c0_59, %c0_60] : memref<1x8x8x128xf32, #tpu.memory_space<vmem>>, vector<1x1x8x128xf32>
    %81 = vector.shape_cast %80 : vector<1x1x8x128xf32> to vector<1x8x128xf32>
    %82 = vector.broadcast %75 : vector<2x1x128xf32> to vector<2x8x128xf32>
    %83 = vector.broadcast %79 : vector<1x8x128xf32> to vector<2x8x128xf32>
    %84 = arith.mulf %82, %83 : vector<2x8x128xf32>
    %85 = arith.addf %65, %84 : vector<2x8x128xf32>
    %86 = vector.broadcast %77 : vector<2x1x128xf32> to vector<2x8x128xf32>
    %87 = vector.broadcast %81 : vector<1x8x128xf32> to vector<2x8x128xf32>
    %88 = arith.mulf %86, %87 : vector<2x8x128xf32>
    %89 = arith.subf %85, %88 : vector<2x8x128xf32>
    %90 = vector.broadcast %77 : vector<2x1x128xf32> to vector<2x8x128xf32>
    %91 = vector.broadcast %79 : vector<1x8x128xf32> to vector<2x8x128xf32>
    %92 = arith.mulf %90, %91 : vector<2x8x128xf32>
    %93 = arith.addf %73, %92 : vector<2x8x128xf32>
    %94 = vector.broadcast %75 : vector<2x1x128xf32> to vector<2x8x128xf32>
    %95 = vector.broadcast %81 : vector<1x8x128xf32> to vector<2x8x128xf32>
    %96 = arith.mulf %94, %95 : vector<2x8x128xf32>
    %97 = arith.addf %93, %96 : vector<2x8x128xf32>
    %c0_61 = arith.constant 0 : index
    %c0_62 = arith.constant 0 : index
    %c4 = arith.constant 4 : index
    %c0_63 = arith.constant 0 : index
    %98 = vector.load %arg2[%c0_61, %c0_62, %c4, %c0_63] : memref<1x2x8x128xf32, #tpu.memory_space<vmem>>, vector<1x2x1x128xf32>
    %99 = vector.shape_cast %98 : vector<1x2x1x128xf32> to vector<2x1x128xf32>
    %c0_64 = arith.constant 0 : index
    %c0_65 = arith.constant 0 : index
    %c4_66 = arith.constant 4 : index
    %c0_67 = arith.constant 0 : index
    %100 = vector.load %arg3[%c0_64, %c0_65, %c4_66, %c0_67] : memref<1x2x8x128xf32, #tpu.memory_space<vmem>>, vector<1x2x1x128xf32>
    %101 = vector.shape_cast %100 : vector<1x2x1x128xf32> to vector<2x1x128xf32>
    %c0_68 = arith.constant 0 : index
    %c4_69 = arith.constant 4 : index
    %c0_70 = arith.constant 0 : index
    %c0_71 = arith.constant 0 : index
    %102 = vector.load %arg4[%c0_68, %c4_69, %c0_70, %c0_71] : memref<1x8x8x128xf32, #tpu.memory_space<vmem>>, vector<1x1x8x128xf32>
    %103 = vector.shape_cast %102 : vector<1x1x8x128xf32> to vector<1x8x128xf32>
    %c0_72 = arith.constant 0 : index
    %c4_73 = arith.constant 4 : index
    %c0_74 = arith.constant 0 : index
    %c0_75 = arith.constant 0 : index
    %104 = vector.load %arg5[%c0_72, %c4_73, %c0_74, %c0_75] : memref<1x8x8x128xf32, #tpu.memory_space<vmem>>, vector<1x1x8x128xf32>
    %105 = vector.shape_cast %104 : vector<1x1x8x128xf32> to vector<1x8x128xf32>
    %106 = vector.broadcast %99 : vector<2x1x128xf32> to vector<2x8x128xf32>
    %107 = vector.broadcast %103 : vector<1x8x128xf32> to vector<2x8x128xf32>
    %108 = arith.mulf %106, %107 : vector<2x8x128xf32>
    %109 = arith.addf %89, %108 : vector<2x8x128xf32>
    %110 = vector.broadcast %101 : vector<2x1x128xf32> to vector<2x8x128xf32>
    %111 = vector.broadcast %105 : vector<1x8x128xf32> to vector<2x8x128xf32>
    %112 = arith.mulf %110, %111 : vector<2x8x128xf32>
    %113 = arith.subf %109, %112 : vector<2x8x128xf32>
    %114 = vector.broadcast %101 : vector<2x1x128xf32> to vector<2x8x128xf32>
    %115 = vector.broadcast %103 : vector<1x8x128xf32> to vector<2x8x128xf32>
    %116 = arith.mulf %114, %115 : vector<2x8x128xf32>
    %117 = arith.addf %97, %116 : vector<2x8x128xf32>
    %118 = vector.broadcast %99 : vector<2x1x128xf32> to vector<2x8x128xf32>
    %119 = vector.broadcast %105 : vector<1x8x128xf32> to vector<2x8x128xf32>
    %120 = arith.mulf %118, %119 : vector<2x8x128xf32>
    %121 = arith.addf %117, %120 : vector<2x8x128xf32>
    %c0_76 = arith.constant 0 : index
    %c0_77 = arith.constant 0 : index
    %c5 = arith.constant 5 : index
    %c0_78 = arith.constant 0 : index
    %122 = vector.load %arg2[%c0_76, %c0_77, %c5, %c0_78] : memref<1x2x8x128xf32, #tpu.memory_space<vmem>>, vector<1x2x1x128xf32>
    %123 = vector.shape_cast %122 : vector<1x2x1x128xf32> to vector<2x1x128xf32>
    %c0_79 = arith.constant 0 : index
    %c0_80 = arith.constant 0 : index
    %c5_81 = arith.constant 5 : index
    %c0_82 = arith.constant 0 : index
    %124 = vector.load %arg3[%c0_79, %c0_80, %c5_81, %c0_82] : memref<1x2x8x128xf32, #tpu.memory_space<vmem>>, vector<1x2x1x128xf32>
    %125 = vector.shape_cast %124 : vector<1x2x1x128xf32> to vector<2x1x128xf32>
    %c0_83 = arith.constant 0 : index
    %c5_84 = arith.constant 5 : index
    %c0_85 = arith.constant 0 : index
    %c0_86 = arith.constant 0 : index
    %126 = vector.load %arg4[%c0_83, %c5_84, %c0_85, %c0_86] : memref<1x8x8x128xf32, #tpu.memory_space<vmem>>, vector<1x1x8x128xf32>
    %127 = vector.shape_cast %126 : vector<1x1x8x128xf32> to vector<1x8x128xf32>
    %c0_87 = arith.constant 0 : index
    %c5_88 = arith.constant 5 : index
    %c0_89 = arith.constant 0 : index
    %c0_90 = arith.constant 0 : index
    %128 = vector.load %arg5[%c0_87, %c5_88, %c0_89, %c0_90] : memref<1x8x8x128xf32, #tpu.memory_space<vmem>>, vector<1x1x8x128xf32>
    %129 = vector.shape_cast %128 : vector<1x1x8x128xf32> to vector<1x8x128xf32>
    %130 = vector.broadcast %123 : vector<2x1x128xf32> to vector<2x8x128xf32>
    %131 = vector.broadcast %127 : vector<1x8x128xf32> to vector<2x8x128xf32>
    %132 = arith.mulf %130, %131 : vector<2x8x128xf32>
    %133 = arith.addf %113, %132 : vector<2x8x128xf32>
    %134 = vector.broadcast %125 : vector<2x1x128xf32> to vector<2x8x128xf32>
    %135 = vector.broadcast %129 : vector<1x8x128xf32> to vector<2x8x128xf32>
    %136 = arith.mulf %134, %135 : vector<2x8x128xf32>
    %137 = arith.subf %133, %136 : vector<2x8x128xf32>
    %138 = vector.broadcast %125 : vector<2x1x128xf32> to vector<2x8x128xf32>
    %139 = vector.broadcast %127 : vector<1x8x128xf32> to vector<2x8x128xf32>
    %140 = arith.mulf %138, %139 : vector<2x8x128xf32>
    %141 = arith.addf %121, %140 : vector<2x8x128xf32>
    %142 = vector.broadcast %123 : vector<2x1x128xf32> to vector<2x8x128xf32>
    %143 = vector.broadcast %129 : vector<1x8x128xf32> to vector<2x8x128xf32>
    %144 = arith.mulf %142, %143 : vector<2x8x128xf32>
    %145 = arith.addf %141, %144 : vector<2x8x128xf32>
    %c0_91 = arith.constant 0 : index
    %c0_92 = arith.constant 0 : index
    %c6 = arith.constant 6 : index
    %c0_93 = arith.constant 0 : index
    %146 = vector.load %arg2[%c0_91, %c0_92, %c6, %c0_93] : memref<1x2x8x128xf32, #tpu.memory_space<vmem>>, vector<1x2x1x128xf32>
    %147 = vector.shape_cast %146 : vector<1x2x1x128xf32> to vector<2x1x128xf32>
    %c0_94 = arith.constant 0 : index
    %c0_95 = arith.constant 0 : index
    %c6_96 = arith.constant 6 : index
    %c0_97 = arith.constant 0 : index
    %148 = vector.load %arg3[%c0_94, %c0_95, %c6_96, %c0_97] : memref<1x2x8x128xf32, #tpu.memory_space<vmem>>, vector<1x2x1x128xf32>
    %149 = vector.shape_cast %148 : vector<1x2x1x128xf32> to vector<2x1x128xf32>
    %c0_98 = arith.constant 0 : index
    %c6_99 = arith.constant 6 : index
    %c0_100 = arith.constant 0 : index
    %c0_101 = arith.constant 0 : index
    %150 = vector.load %arg4[%c0_98, %c6_99, %c0_100, %c0_101] : memref<1x8x8x128xf32, #tpu.memory_space<vmem>>, vector<1x1x8x128xf32>
    %151 = vector.shape_cast %150 : vector<1x1x8x128xf32> to vector<1x8x128xf32>
    %c0_102 = arith.constant 0 : index
    %c6_103 = arith.constant 6 : index
    %c0_104 = arith.constant 0 : index
    %c0_105 = arith.constant 0 : index
    %152 = vector.load %arg5[%c0_102, %c6_103, %c0_104, %c0_105] : memref<1x8x8x128xf32, #tpu.memory_space<vmem>>, vector<1x1x8x128xf32>
    %153 = vector.shape_cast %152 : vector<1x1x8x128xf32> to vector<1x8x128xf32>
    %154 = vector.broadcast %147 : vector<2x1x128xf32> to vector<2x8x128xf32>
    %155 = vector.broadcast %151 : vector<1x8x128xf32> to vector<2x8x128xf32>
    %156 = arith.mulf %154, %155 : vector<2x8x128xf32>
    %157 = arith.addf %137, %156 : vector<2x8x128xf32>
    %158 = vector.broadcast %149 : vector<2x1x128xf32> to vector<2x8x128xf32>
    %159 = vector.broadcast %153 : vector<1x8x128xf32> to vector<2x8x128xf32>
    %160 = arith.mulf %158, %159 : vector<2x8x128xf32>
    %161 = arith.subf %157, %160 : vector<2x8x128xf32>
    %162 = vector.broadcast %149 : vector<2x1x128xf32> to vector<2x8x128xf32>
    %163 = vector.broadcast %151 : vector<1x8x128xf32> to vector<2x8x128xf32>
    %164 = arith.mulf %162, %163 : vector<2x8x128xf32>
    %165 = arith.addf %145, %164 : vector<2x8x128xf32>
    %166 = vector.broadcast %147 : vector<2x1x128xf32> to vector<2x8x128xf32>
    %167 = vector.broadcast %153 : vector<1x8x128xf32> to vector<2x8x128xf32>
    %168 = arith.mulf %166, %167 : vector<2x8x128xf32>
    %169 = arith.addf %165, %168 : vector<2x8x128xf32>
    %c0_106 = arith.constant 0 : index
    %c0_107 = arith.constant 0 : index
    %c7 = arith.constant 7 : index
    %c0_108 = arith.constant 0 : index
    %170 = vector.load %arg2[%c0_106, %c0_107, %c7, %c0_108] : memref<1x2x8x128xf32, #tpu.memory_space<vmem>>, vector<1x2x1x128xf32>
    %171 = vector.shape_cast %170 : vector<1x2x1x128xf32> to vector<2x1x128xf32>
    %c0_109 = arith.constant 0 : index
    %c0_110 = arith.constant 0 : index
    %c7_111 = arith.constant 7 : index
    %c0_112 = arith.constant 0 : index
    %172 = vector.load %arg3[%c0_109, %c0_110, %c7_111, %c0_112] : memref<1x2x8x128xf32, #tpu.memory_space<vmem>>, vector<1x2x1x128xf32>
    %173 = vector.shape_cast %172 : vector<1x2x1x128xf32> to vector<2x1x128xf32>
    %c0_113 = arith.constant 0 : index
    %c7_114 = arith.constant 7 : index
    %c0_115 = arith.constant 0 : index
    %c0_116 = arith.constant 0 : index
    %174 = vector.load %arg4[%c0_113, %c7_114, %c0_115, %c0_116] : memref<1x8x8x128xf32, #tpu.memory_space<vmem>>, vector<1x1x8x128xf32>
    %175 = vector.shape_cast %174 : vector<1x1x8x128xf32> to vector<1x8x128xf32>
    %c0_117 = arith.constant 0 : index
    %c7_118 = arith.constant 7 : index
    %c0_119 = arith.constant 0 : index
    %c0_120 = arith.constant 0 : index
    %176 = vector.load %arg5[%c0_117, %c7_118, %c0_119, %c0_120] : memref<1x8x8x128xf32, #tpu.memory_space<vmem>>, vector<1x1x8x128xf32>
    %177 = vector.shape_cast %176 : vector<1x1x8x128xf32> to vector<1x8x128xf32>
    %178 = vector.broadcast %171 : vector<2x1x128xf32> to vector<2x8x128xf32>
    %179 = vector.broadcast %175 : vector<1x8x128xf32> to vector<2x8x128xf32>
    %180 = arith.mulf %178, %179 : vector<2x8x128xf32>
    %181 = arith.addf %161, %180 : vector<2x8x128xf32>
    %182 = vector.broadcast %173 : vector<2x1x128xf32> to vector<2x8x128xf32>
    %183 = vector.broadcast %177 : vector<1x8x128xf32> to vector<2x8x128xf32>
    %184 = arith.mulf %182, %183 : vector<2x8x128xf32>
    %185 = arith.subf %181, %184 : vector<2x8x128xf32>
    %186 = vector.broadcast %173 : vector<2x1x128xf32> to vector<2x8x128xf32>
    %187 = vector.broadcast %175 : vector<1x8x128xf32> to vector<2x8x128xf32>
    %188 = arith.mulf %186, %187 : vector<2x8x128xf32>
    %189 = arith.addf %169, %188 : vector<2x8x128xf32>
    %190 = vector.broadcast %171 : vector<2x1x128xf32> to vector<2x8x128xf32>
    %191 = vector.broadcast %177 : vector<1x8x128xf32> to vector<2x8x128xf32>
    %192 = arith.mulf %190, %191 : vector<2x8x128xf32>
    %193 = arith.addf %189, %192 : vector<2x8x128xf32>
    %c0_121 = arith.constant 0 : index
    %c0_122 = arith.constant 0 : index
    %c0_123 = arith.constant 0 : index
    %c0_124 = arith.constant 0 : index
    %194 = vector.load %arg6[%c0_121, %c0_122, %c0_123, %c0_124] : memref<1x2x8x128xf32, #tpu.memory_space<vmem>>, vector<1x2x8x128xf32>
    %195 = vector.shape_cast %194 : vector<1x2x8x128xf32> to vector<2x8x128xf32>
    %196 = vector.shape_cast %185 : vector<2x8x128xf32> to vector<1x2x8x128xf32>
    tpu.vector_store %arg6[%c0_121, %c0_122, %c0_123, %c0_124], %196 {strides = array<i32>} : memref<1x2x8x128xf32, #tpu.memory_space<vmem>>, vector<1x2x8x128xf32>,
    %c0_125 = arith.constant 0 : index
    %c0_126 = arith.constant 0 : index
    %c0_127 = arith.constant 0 : index
    %c0_128 = arith.constant 0 : index
    %197 = vector.load %arg7[%c0_125, %c0_126, %c0_127, %c0_128] : memref<1x2x8x128xf32, #tpu.memory_space<vmem>>, vector<1x2x8x128xf32>
    %198 = vector.shape_cast %197 : vector<1x2x8x128xf32> to vector<2x8x128xf32>
    %199 = vector.shape_cast %193 : vector<2x8x128xf32> to vector<1x2x8x128xf32>
    tpu.vector_store %arg7[%c0_125, %c0_126, %c0_127, %c0_128], %199 {strides = array<i32>} : memref<1x2x8x128xf32, #tpu.memory_space<vmem>>, vector<1x2x8x128xf32>,
    return
  }
  func.func @transform_0(%arg0: i32, %arg1: i32) -> (i32, i32, i32, i32) {
    %c0_i32 = arith.constant 0 : i32
    %c0_i32_0 = arith.constant 0 : i32
    %c0_i32_1 = arith.constant 0 : i32
    return %arg0, %c0_i32, %c0_i32_0, %arg1 : i32, i32, i32, i32
  }
  func.func @transform_1(%arg0: i32, %arg1: i32) -> (i32, i32, i32, i32) {
    %c0_i32 = arith.constant 0 : i32
    %c0_i32_0 = arith.constant 0 : i32
    %c0_i32_1 = arith.constant 0 : i32
    return %arg0, %c0_i32, %c0_i32_0, %arg1 : i32, i32, i32, i32
  }
  func.func @transform_2(%arg0: i32, %arg1: i32) -> (i32, i32, i32, i32) {
    %c0_i32 = arith.constant 0 : i32
    %c0_i32_0 = arith.constant 0 : i32
    %c0_i32_1 = arith.constant 0 : i32
    return %arg0, %c0_i32, %c0_i32_0, %arg1 : i32, i32, i32, i32
  }
  func.func @transform_3(%arg0: i32, %arg1: i32) -> (i32, i32, i32, i32) {
    %c0_i32 = arith.constant 0 : i32
    %c0_i32_0 = arith.constant 0 : i32
    %c0_i32_1 = arith.constant 0 : i32
    return %arg0, %c0_i32, %c0_i32_0, %arg1 : i32, i32, i32, i32
  }
  func.func @transform_4(%arg0: i32, %arg1: i32) -> (i32, i32, i32, i32) {
    %c0_i32 = arith.constant 0 : i32
    %c0_i32_0 = arith.constant 0 : i32
    %c0_i32_1 = arith.constant 0 : i32
    return %arg0, %c0_i32, %c0_i32_0, %arg1 : i32, i32, i32, i32
  }
  func.func @transform_5(%arg0: i32, %arg1: i32) -> (i32, i32, i32, i32) {
    %c0_i32 = arith.constant 0 : i32
    %c0_i32_0 = arith.constant 0 : i32
    %c0_i32_1 = arith.constant 0 : i32
    return %arg0, %c0_i32, %c0_i32_0, %arg1 : i32, i32, i32, i32
  }
}

</mosaic_0001>

<bundles_post_ra>
// kernel: spectral_conv3d_fast.1
= control target key start
LH: loop header
LB: loop body
LE: loop exit
PB: predicated region body
PF: predicated region fallthrough
CT: control target
= control target key end

     0   :  { %s1025_s18 = smov 0   ;;  %s1027_s19 = smov 0   ;;  %s1222_s0 = inlined_call_operand.vmem [shape: f32[4,2,8,128], index: 0, kind: input, shape index: {}]   ;;  %s1223_s1 = inlined_call_operand.vmem [shape: f32[4,2,8,128], index: 1, kind: input, shape index: {}]   ;;  %s1224_s2 = inlined_call_operand.vmem [shape: f32[4,8,8,128], index: 2, kind: input, shape index: {}]   ;;  %s1225_s3 = inlined_call_operand.vmem [shape: f32[4,8,8,128], index: 3, kind: input, shape index: {}]   ;;  %s1226_s4 = inlined_call_operand.vmem [shape: f32[4,2,8,128], index: 4, kind: output, shape index: {0}]   ;;  %s1227_s5 = inlined_call_operand.vmem [shape: f32[4,2,8,128], index: 5, kind: output, shape index: {1}]  }
   0x1   :  { %s1029_s20 = smov 0  }
   0x2 LB: > { %s28_s21 = sadd.s32 1, %s989_s19  ;;  %p880_p0 = scmp.ge.s32.totalorder %s993_s20, 1  ;;  %s993_s20 = sphi %s1029_s20, %s16_s20   ;;  %s989_s19 = sphi %s1027_s19, %s1229_s19   ;;  %s985_s18 = sphi %s1025_s18, %s1228_s18  }
   0x3   : > { %p30_p1 = scmp.ge.s32.totalorder %s28_s21, 4  ;;  %p256_p2 = scmp.lt.s32.totalorder %s993_s20, 5 }
   0x5   : > { %s1231_s21 = smov (%p30_p1, %s28_s21), 0  ;;  %p257_p3 = pnand %p880_p0, %p256_p2 }
   0x6   : > { %p322_p4 = scmp.lt.s32.totalorder (!%p257_p3), %s985_s18, 3 }
   0x7   : > { %260 = sbr.rel (%p257_p3) target bundleno = 62 (0x3e), region = 36 }
   0xe   : > { %s1233_s18 = smov (!%p322_p4, %s985_s18), 3 }
   0xf   : > { %s1043_s22 = sshll.u32 %s1233_s18, 4  ;;  %s943_s23 = sshll.u32 %s1233_s18, 6 }
  0x10   : > { %s1049_s26 = scalar_lea.vmem %s1222_s0, %s1043_s22  ;;  %s1055_s29 = scalar_lea.vmem %s1223_s1, %s1043_s22 }
  0x11   : > { %s1060_s7 = scalar_lea.vmem %s1224_s2, %s943_s23  ;;  %s1065_s10 = scalar_lea.vmem %s1225_s3, %s943_s23  ;;  %v893_v0 = vld [vmem:[%s1049_s26] ss:$0 sm:$0xff]  ;;  %v894_v2 = vld [vmem:[%s1049_s26 + $0x8] ss:$0 sm:$0xff]  ;;  %v899_v7 = vld [vmem:[%s1049_s26 + $0x1] ss:$0 sm:$0xff] }
  0x12   : > { %v895_v1 = vld [vmem:[%s1055_s29] ss:$0 sm:$0xff]  ;;  %v901_v8 = vld [vmem:[%s1055_s29 + $0x1] ss:$0 sm:$0xff]  ;;  %v1075_v9 = vld [vmem:[%s1060_s7 + $0x8] sm:$0xff]  ;;  %s1193_s13 = scalar_lea.vmem %s1226_s4, %s1043_s22  ;;  %s369_s16 = scalar_lea.vmem %s1227_s5, %s1043_s22 }
  0x13   : > { %v374_v3 = vld [vmem:[%s1060_s7] sm:$0xff]  ;;  %v896_v10 = vld [vmem:[%s1055_s29 + $0x8] ss:$0 sm:$0xff]  ;;  %v424_v16 = vmul.f32 %v899_v7, %v1075_v9  ;;  %v1086_v19 = vld [vmem:[%s1060_s7 + $0x10] sm:$0xff]  ;;  %v440_v23 = vmul.f32 %v901_v8, %v1075_v9 }
  0x14   : > { %v375_v4 = vld [vmem:[%s1065_s10] sm:$0xff]  ;;  %v384_v5 = vmul.f32 %v893_v0, %v374_v3  ;;  %v400_v11 = vmul.f32 %v895_v1, %v374_v3  ;;  %v1079_v13 = vld [vmem:[%s1065_s10 + $0x8] sm:$0xff]  ;;  %v385_v20 = vmul.f32 %v894_v2, %v374_v3  ;;  %v1089_v21 = vld [vmem:[%s1065_s10 + $0x10] sm:$0xff]  ;;  %v401_v61 = vmul.f32 %v896_v10, %v374_v3 }
  0x15   : > { %v396_v6 = vmul.f32 %v895_v1, %v375_v4  ;;  %v404_v12 = vmul.f32 %v893_v0, %v375_v4  ;;  %v905_v14 = vld [vmem:[%s1049_s26 + $0x2] ss:$0 sm:$0xff]  ;;  %v436_v17 = vmul.f32 %v901_v8, %v1079_v13  ;;  %v397_v24 = vmul.f32 %v896_v10, %v375_v4  ;;  %v911_v28 = vld [vmem:[%s1049_s26 + $0x3] ss:$0 sm:$0xff]  ;;  %v1096_v29 = vld [vmem:[%s1060_s7 + $0x18] sm:$0xff] }
  0x16   : > { %v907_v18 = vld [vmem:[%s1055_s29 + $0x2] ss:$0 sm:$0xff]  ;;  %v464_v26 = vmul.f32 %v905_v14, %v1086_v19  ;;  %v444_v27 = vmul.f32 %v899_v7, %v1079_v13  ;;  %v1101_v34 = vld [vmem:[%s1065_s10 + $0x18] sm:$0xff]  ;;  %v484_v36 = vmul.f32 %v905_v14, %v1089_v21  ;;  %v913_v38 = vld [vmem:[%s1055_s29 + $0x3] ss:$0 sm:$0xff]  ;;  %v504_v39 = vmul.f32 %v911_v28, %v1096_v29 }
  0x17   : > { %v398_v15 = vsub.f32 %v384_v5, %v396_v6  ;;  %v406_v22 = vadd.f32 %v404_v12, %v400_v11  ;;  %v480_v31 = vmul.f32 %v907_v18, %v1086_v19  ;;  %v476_v33 = vmul.f32 %v907_v18, %v1089_v21  ;;  %v917_v40 = vld [vmem:[%s1049_s26 + $0x4] ss:$0 sm:$0xff]  ;;  %v900_v43 = vld [vmem:[%s1049_s26 + $0x9] ss:$0 sm:$0xff]  ;;  %v906_v50 = vld [vmem:[%s1049_s26 + $0xa] ss:$0 sm:$0xff] }
  0x18   : > { %v399_v41 = vsub.f32 %v385_v20, %v397_v24  ;;  %v1108_v42 = vld [vmem:[%s1060_s7 + $0x20] sm:$0xff]  ;;  %v902_v44 = vld [vmem:[%s1055_s29 + $0x9] ss:$0 sm:$0xff]  ;;  %v516_v47 = vmul.f32 %v913_v38, %v1101_v34  ;;  %v425_v48 = vmul.f32 %v900_v43, %v1075_v9  ;;  %v520_v53 = vmul.f32 %v913_v38, %v1096_v29  ;;  %v908_v63 = vld [vmem:[%s1055_s29 + $0xa] ss:$0 sm:$0xff] }
  0x19   : > { %v426_v25 = vadd.f32 %v424_v16, %v398_v15  ;;  %v442_v30 = vadd.f32 %v440_v23, %v406_v22  ;;  %v437_v49 = vmul.f32 %v902_v44, %v1079_v13  ;;  %v1117_v51 = vld [vmem:[%s1065_s10 + $0x20] sm:$0xff]  ;;  %v544_v56 = vmul.f32 %v917_v40, %v1108_v42  ;;  %v1124_v58 = vld [vmem:[%s1060_s7 + $0x28] sm:$0xff]  ;;  %v1145_v18 = vld [vmem:[%s1060_s7 + $0x30] sm:$0xff] }
  0x1a   : > { %v919_v55 = vld [vmem:[%s1055_s29 + $0x4] ss:$0 sm:$0xff]  ;;  %v923_v57 = vld [vmem:[%s1049_s26 + $0x5] ss:$0 sm:$0xff]  ;;  %v427_v59 = vadd.f32 %v425_v48, %v399_v41  ;;  %v465_v60 = vmul.f32 %v906_v50, %v1086_v19  ;;  %v405_v62 = vmul.f32 %v894_v2, %v375_v4  ;;  %v1129_v0 = vld [vmem:[%s1049_s26 + $0xb] ss:$0 sm:$0xff]  ;;  %v524_v1 = vmul.f32 %v911_v28, %v1101_v34 }
  0x1b   : > { %v438_v32 = vsub.f32 %v426_v25, %v436_v17  ;;  %v446_v35 = vadd.f32 %v444_v27, %v442_v30  ;;  %v556_v6 = vmul.f32 %v919_v55, %v1117_v51  ;;  %v477_v8 = vmul.f32 %v908_v63, %v1089_v21  ;;  %v1135_v11 = vld [vmem:[%s1065_s10 + $0x28] sm:$0xff]  ;;  %v925_v10 = vld [vmem:[%s1055_s29 + $0x5] ss:$0 sm:$0xff]  ;;  %v929_v14 = vld [vmem:[%s1049_s26 + $0x6] ss:$0 sm:$0xff] }
  0x1c   : > { %v439_v7 = vsub.f32 %v427_v59, %v437_v49  ;;  %v584_v12 = vmul.f32 %v923_v57, %v1124_v58  ;;  %v560_v2 = vmul.f32 %v919_v55, %v1108_v42  ;;  %v505_v16 = vmul.f32 %v1129_v0, %v1096_v29  ;;  %v914_v20 = vld [vmem:[%s1055_s29 + $0xb] ss:$0 sm:$0xff]  ;;  %v1149_v22 = vld [vmem:[%s1049_s26 + $0xc] ss:$0 sm:$0xff]  ;;  %v931_v38 = vld [vmem:[%s1055_s29 + $0x6] ss:$0 sm:$0xff] }
  0x1d   : > { %v466_v37 = vadd.f32 %v464_v26, %v438_v32  ;;  %v482_v45 = vadd.f32 %v480_v31, %v446_v35  ;;  %v564_v17 = vmul.f32 %v917_v40, %v1117_v51  ;;  %v407_v24 = vadd.f32 %v405_v62, %v401_v61  ;;  %v1156_v32 = vld [vmem:[%s1065_s10 + $0x30] sm:$0xff]  ;;  %v934_v55 = vld [vmem:[%s1065_s10 + $0x38] sm:$0xff] }
  0x1e   : > { %v467_v15 = vadd.f32 %v465_v60, %v439_v7  ;;  %v441_v25 = vmul.f32 %v902_v44, %v1075_v9  ;;  %v445_v26 = vmul.f32 %v900_v43, %v1079_v13  ;;  %v596_v28 = vmul.f32 %v925_v10, %v1135_v11  ;;  %v1166_v43 = vld [vmem:[%s1060_s7 + $0x38] sm:$0xff]  ;;  %v920_v44 = vld [vmem:[%s1055_s29 + $0xc] ss:$0 sm:$0xff] }
  0x1f   : > { %v478_v46 = vsub.f32 %v466_v37, %v476_v33  ;;  %v486_v52 = vadd.f32 %v484_v36, %v482_v45  ;;  %v517_v31 = vmul.f32 %v914_v20, %v1101_v34  ;;  %v600_v35 = vmul.f32 %v925_v10, %v1124_v58  ;;  %v924_v45 = vld [vmem:[%s1049_s26 + $0xd] ss:$0 sm:$0xff] }
  0x20   : > { %v479_v30 = vsub.f32 %v467_v15, %v477_v8  ;;  %v443_v36 = vadd.f32 %v441_v25, %v407_v24  ;;  %v481_v37 = vmul.f32 %v908_v63, %v1086_v19  ;;  %v624_v13 = vmul.f32 %v929_v14, %v1145_v18 }
  0x21   : > { %v506_v54 = vadd.f32 %v504_v39, %v478_v46  ;;  %v522_v3 = vadd.f32 %v520_v53, %v486_v52  ;;  %v935_v39 = vld [vmem:[%s1049_s26 + $0x7] ss:$0 sm:$0xff]  ;;  %v545_v41 = vmul.f32 %v1149_v22, %v1108_v42  ;;  %v485_v19 = vmul.f32 %v906_v50, %v1089_v21  ;;  %v926_v50 = vld [vmem:[%s1055_s29 + $0xd] ss:$0 sm:$0xff] }
  0x22   : > { %v507_v40 = vadd.f32 %v505_v16, %v479_v30  ;;  %v447_v48 = vadd.f32 %v445_v26, %v443_v36  ;;  %v636_v52 = vmul.f32 %v931_v38, %v1156_v32  ;;  %v640_v59 = vmul.f32 %v931_v38, %v1145_v18 }
  0x23   : > { %v518_v5 = vsub.f32 %v506_v54, %v516_v47  ;;  %v526_v23 = vadd.f32 %v524_v1, %v522_v3  ;;  %v604_v47 = vmul.f32 %v923_v57, %v1135_v11  ;;  %v557_v54 = vmul.f32 %v920_v44, %v1117_v51  ;;  %v937_v57 = vld [vmem:[%s1055_s29 + $0x7] ss:$0 sm:$0xff] }
  0x24   : > { %v519_v53 = vsub.f32 %v507_v40, %v517_v31  ;;  %v483_v60 = vadd.f32 %v481_v37, %v447_v48  ;;  %v521_v61 = vmul.f32 %v914_v20, %v1096_v29  ;;  %v664_v63 = vmul.f32 %v935_v39, %v1166_v43 }
  0x25   : > { %v546_v4 = vadd.f32 %v544_v56, %v518_v5  ;;  %v562_v33 = vadd.f32 %v560_v2, %v526_v23  ;;  %v585_v21 = vmul.f32 %v924_v45, %v1124_v58  ;;  %v930_v5 = vld [vmem:[%s1049_s26 + $0xe] ss:$0 sm:$0xff]  ;;  %v644_v7 = vmul.f32 %v929_v14, %v1156_v32 }
  0x26   : > { %v547_v1 = vadd.f32 %v545_v41, %v519_v53  ;;  %v487_v8 = vadd.f32 %v485_v19, %v483_v60  ;;  %v676_v3 = vmul.f32 %v937_v57, %v934_v55  ;;  %v680_v15 = vmul.f32 %v937_v57, %v1166_v43 }
  0x27   : > { %v558_v27 = vsub.f32 %v546_v4, %v556_v6  ;;  %v566_v46 = vadd.f32 %v564_v17, %v562_v33  ;;  %v597_v4 = vmul.f32 %v926_v50, %v1135_v11  ;;  %v561_v17 = vmul.f32 %v920_v44, %v1108_v42 }
  0x28   : > { %v559_v2 = vsub.f32 %v547_v1, %v557_v54  ;;  %v523_v16 = vadd.f32 %v521_v61, %v487_v8  ;;  %v625_v14 = vmul.f32 %v930_v5, %v1145_v18  ;;  %v684_v25 = vmul.f32 %v935_v39, %v934_v55 }
  0x29   : > { %v586_v9 = vadd.f32 %v584_v12, %v558_v27  ;;  %v602_v56 = vadd.f32 %v600_v35, %v566_v46  ;;  %v525_v12 = vmul.f32 %v1129_v0, %v1101_v34  ;;  %v932_v34 = vld [vmem:[%s1055_s29 + $0xe] ss:$0 sm:$0xff]  ;;  %v936_v0 = vld [vmem:[%s1049_s26 + $0xf] ss:$0 sm:$0xff]  ;;  %v565_v42 = vmul.f32 %v1149_v22, %v1117_v51 }
  0x2a   : > { %v587_v23 = vadd.f32 %v585_v21, %v559_v2  ;;  %v637_v30 = vmul.f32 %v932_v34, %v1156_v32  ;;  %v601_v35 = vmul.f32 %v926_v50, %v1124_v58  ;;  %v665_v37 = vmul.f32 %v936_v0, %v1166_v43 }
  0x2b   : > { %v598_v49 = vsub.f32 %v586_v9, %v596_v28  ;;  %v606_v6 = vadd.f32 %v604_v47, %v602_v56  ;;  %v527_v26 = vadd.f32 %v525_v12, %v523_v16  ;;  %v938_v9 = vld [vmem:[%s1055_s29 + $0xf] ss:$0 sm:$0xff]  ;;  %v605_v22 = vmul.f32 %v924_v45, %v1135_v11 }
  0x2c   : > { %v599_v28 = vsub.f32 %v587_v23, %v597_v4  ;;  %v677_v39 = vmul.f32 %v938_v9, %v934_v55  ;;  %v641_v58 = vmul.f32 %v932_v34, %v1145_v18  ;;  %v645_v46 = vmul.f32 %v930_v5, %v1156_v32 }
  0x2d   : > { %v626_v62 = vadd.f32 %v624_v13, %v598_v49  ;;  %v642_v10 = vadd.f32 %v640_v59, %v606_v6  ;;  %v563_v33 = vadd.f32 %v561_v17, %v527_v26  ;;  %v681_v19 = vmul.f32 %v938_v9, %v1166_v43 }
  0x2e   : > { %v627_v36 = vadd.f32 %v625_v14, %v599_v28 }
  0x2f   : > { %v638_v29 = vsub.f32 %v626_v62, %v636_v52  ;;  %v646_v24 = vadd.f32 %v644_v7, %v642_v10  ;;  %v567_v51 = vadd.f32 %v565_v42, %v563_v33  ;;  %v685_v52 = vmul.f32 %v936_v0, %v934_v55 }
  0x30   : > { %v639_v13 = vsub.f32 %v627_v36, %v637_v30 }
  0x31   : > { %v666_v20 = vadd.f32 %v664_v63, %v638_v29  ;;  %v682_v31 = vadd.f32 %v680_v15, %v646_v24  ;;  %v603_v40 = vadd.f32 %v601_v35, %v567_v51 }
  0x32   : > { %v667_v41 = vadd.f32 %v665_v37, %v639_v13 }
  0x33   : > { %v678_v27 = vsub.f32 %v666_v20, %v676_v3  ;;  %v686_v38 = vadd.f32 %v684_v25, %v682_v31  ;;  %v607_v44 = vadd.f32 %v605_v22, %v603_v40 }
  0x34   : > { %v679_v47 = vsub.f32 %v667_v41, %v677_v39 }
  0x35   : > { %688 = vst [vmem:[%s1193_s13] sm:$0xff] %v678_v27  ;;  %690 = vst [vmem:[%s369_s16] sm:$0xff] %v686_v38  ;;  %v643_v48 = vadd.f32 %v641_v58, %v607_v44 }
  0x36   : > { %689 = vst [vmem:[%s1193_s13 + $0x8] sm:$0xff] %v679_v47 }
  0x37   : > { %v647_v49 = vadd.f32 %v645_v46, %v643_v48 }
  0x39   : > { %v683_v53 = vadd.f32 %v681_v19, %v647_v49 }
  0x3b   : > { %v687_v54 = vadd.f32 %v685_v52, %v683_v53 }
  0x3d   : > { %691 = vst [vmem:[%s369_s16 + $0x8] sm:$0xff] %v687_v54 }
  0x3e PF: > { %s16_s20 = sadd.s32 1, %s993_s20   ;;  %s1228_s18 = smov %s989_s19 }
  0x3f   : > { %p13_p5 = scmp.ge.s32.totalorder %s16_s20, 6   ;;  %s1229_s19 = smov %s1231_s21 }
  0x41   :  { %15 = sbr.rel (!%p13_p5) target bundleno = 2 (0x2), region = 101 }

// kernel: reverse.1
= control target key start
LH: loop header
LB: loop body
LE: loop exit
PB: predicated region body
PF: predicated region fallthrough
CT: control target
= control target key end

     0   :  { %s1160_s0 = inlined_call_operand.vmem [shape: f32[2,8,16,16,3], index: 0, kind: input, shape index: {}]   ;;  %s1161_s1 = inlined_call_operand.vmem [shape: f32[2,8,16,16,3], index: 1, kind: output, shape index: {}]  }
   0x1   :  { %v384_v0 = vld [vmem:[%s1160_s0 + $0x20] sm:$0xff]  ;;  %v387_v2 = vld [vmem:[%s1160_s0 + $0x50] sm:$0xff]  ;;  %v478_v48 = vld [vmem:[%s1160_s0 + $0x28] sm:$0xff] }
   0x2   :  { %v385_v1 = vld [vmem:[%s1160_s0 + $0x1a0] sm:$0xff]  ;;  %4 = vst [vmem:[%s1161_s1] sm:$0xff] %v384_v0  ;;  %388 = vst [vmem:[%s1161_s1 + $0x30] sm:$0xff] %v387_v2  ;;  %v389_v3 = vld [vmem:[%s1160_s0 + $0x1d0] sm:$0xff] }
   0x3   :  { %386 = vst [vmem:[%s1161_s1 + $0x180] sm:$0xff] %v385_v1  ;;  %v391_v4 = vld [vmem:[%s1160_s0 + $0x80] sm:$0xff]  ;;  %390 = vst [vmem:[%s1161_s1 + $0x1b0] sm:$0xff] %v389_v3  ;;  %v395_v6 = vld [vmem:[%s1160_s0 + $0xb0] sm:$0xff] }
   0x4   :  { %v393_v5 = vld [vmem:[%s1160_s0 + $0x200] sm:$0xff]  ;;  %392 = vst [vmem:[%s1161_s1 + $0x60] sm:$0xff] %v391_v4  ;;  %v397_v7 = vld [vmem:[%s1160_s0 + $0x230] sm:$0xff]  ;;  %396 = vst [vmem:[%s1161_s1 + $0x90] sm:$0xff] %v395_v6 }
   0x5   :  { %394 = vst [vmem:[%s1161_s1 + $0x1e0] sm:$0xff] %v393_v5  ;;  %v399_v8 = vld [vmem:[%s1160_s0 + $0xe0] sm:$0xff]  ;;  %398 = vst [vmem:[%s1161_s1 + $0x210] sm:$0xff] %v397_v7  ;;  %v403_v10 = vld [vmem:[%s1160_s0 + $0x110] sm:$0xff] }
   0x6   :  { %400 = vst [vmem:[%s1161_s1 + $0xc0] sm:$0xff] %v399_v8  ;;  %v401_v9 = vld [vmem:[%s1160_s0 + $0x260] sm:$0xff]  ;;  %v405_v11 = vld [vmem:[%s1160_s0 + $0x290] sm:$0xff]  ;;  %404 = vst [vmem:[%s1161_s1 + $0xf0] sm:$0xff] %v403_v10 }
   0x7   :  { %402 = vst [vmem:[%s1161_s1 + $0x240] sm:$0xff] %v401_v9  ;;  %406 = vst [vmem:[%s1161_s1 + $0x270] sm:$0xff] %v405_v11  ;;  %v407_v12 = vld [vmem:[%s1160_s0 + $0x140] sm:$0xff]  ;;  %v411_v14 = vld [vmem:[%s1160_s0 + $0x170] sm:$0xff] }
   0x8   :  { %v409_v13 = vld [vmem:[%s1160_s0 + $0x2c0] sm:$0xff]  ;;  %408 = vst [vmem:[%s1161_s1 + $0x120] sm:$0xff] %v407_v12  ;;  %412 = vst [vmem:[%s1161_s1 + $0x150] sm:$0xff] %v411_v14  ;;  %v413_v15 = vld [vmem:[%s1160_s0 + $0x2f0] sm:$0xff] }
   0x9   :  { %410 = vst [vmem:[%s1161_s1 + $0x2a0] sm:$0xff] %v409_v13  ;;  %v415_v16 = vld [vmem:[%s1160_s0 + $0x10] sm:$0xff]  ;;  %414 = vst [vmem:[%s1161_s1 + $0x2d0] sm:$0xff] %v413_v15  ;;  %v419_v18 = vld [vmem:[%s1160_s0 + $0x40] sm:$0xff] }
   0xa   :  { %v417_v17 = vld [vmem:[%s1160_s0 + $0x190] sm:$0xff]  ;;  %416 = vst [vmem:[%s1161_s1 + $0x10] sm:$0xff] %v415_v16  ;;  %v421_v19 = vld [vmem:[%s1160_s0 + $0x1c0] sm:$0xff]  ;;  %420 = vst [vmem:[%s1161_s1 + $0x40] sm:$0xff] %v419_v18 }
   0xb   :  { %418 = vst [vmem:[%s1161_s1 + $0x190] sm:$0xff] %v417_v17  ;;  %v423_v20 = vld [vmem:[%s1160_s0 + $0x70] sm:$0xff]  ;;  %422 = vst [vmem:[%s1161_s1 + $0x1c0] sm:$0xff] %v421_v19  ;;  %v427_v22 = vld [vmem:[%s1160_s0 + $0xa0] sm:$0xff] }
   0xc   :  { %424 = vst [vmem:[%s1161_s1 + $0x70] sm:$0xff] %v423_v20  ;;  %v425_v21 = vld [vmem:[%s1160_s0 + $0x1f0] sm:$0xff]  ;;  %v429_v23 = vld [vmem:[%s1160_s0 + $0x220] sm:$0xff]  ;;  %428 = vst [vmem:[%s1161_s1 + $0xa0] sm:$0xff] %v427_v22 }
   0xd   :  { %426 = vst [vmem:[%s1161_s1 + $0x1f0] sm:$0xff] %v425_v21  ;;  %430 = vst [vmem:[%s1161_s1 + $0x220] sm:$0xff] %v429_v23  ;;  %v431_v24 = vld [vmem:[%s1160_s0 + $0xd0] sm:$0xff]  ;;  %v435_v26 = vld [vmem:[%s1160_s0 + $0x100] sm:$0xff] }
   0xe   :  { %v433_v25 = vld [vmem:[%s1160_s0 + $0x250] sm:$0xff]  ;;  %432 = vst [vmem:[%s1161_s1 + $0xd0] sm:$0xff] %v431_v24  ;;  %436 = vst [vmem:[%s1161_s1 + $0x100] sm:$0xff] %v435_v26  ;;  %v437_v27 = vld [vmem:[%s1160_s0 + $0x280] sm:$0xff] }
   0xf   :  { %434 = vst [vmem:[%s1161_s1 + $0x250] sm:$0xff] %v433_v25  ;;  %v439_v28 = vld [vmem:[%s1160_s0 + $0x130] sm:$0xff]  ;;  %438 = vst [vmem:[%s1161_s1 + $0x280] sm:$0xff] %v437_v27  ;;  %v443_v30 = vld [vmem:[%s1160_s0 + $0x160] sm:$0xff] }
  0x10   :  { %v441_v29 = vld [vmem:[%s1160_s0 + $0x2b0] sm:$0xff]  ;;  %440 = vst [vmem:[%s1161_s1 + $0x130] sm:$0xff] %v439_v28  ;;  %v445_v31 = vld [vmem:[%s1160_s0 + $0x2e0] sm:$0xff]  ;;  %444 = vst [vmem:[%s1161_s1 + $0x160] sm:$0xff] %v443_v30 }
  0x11   :  { %442 = vst [vmem:[%s1161_s1 + $0x2b0] sm:$0xff] %v441_v29  ;;  %v129_v32 = vld [vmem:[%s1160_s0] sm:$0xff]  ;;  %446 = vst [vmem:[%s1161_s1 + $0x2e0] sm:$0xff] %v445_v31  ;;  %v450_v34 = vld [vmem:[%s1160_s0 + $0x30] sm:$0xff] }
  0x12   :  { %447 = vst [vmem:[%s1161_s1 + $0x20] sm:$0xff] %v129_v32  ;;  %v448_v33 = vld [vmem:[%s1160_s0 + $0x180] sm:$0xff]  ;;  %v452_v35 = vld [vmem:[%s1160_s0 + $0x1b0] sm:$0xff]  ;;  %451 = vst [vmem:[%s1161_s1 + $0x50] sm:$0xff] %v450_v34 }
  0x13   :  { %449 = vst [vmem:[%s1161_s1 + $0x1a0] sm:$0xff] %v448_v33  ;;  %453 = vst [vmem:[%s1161_s1 + $0x1d0] sm:$0xff] %v452_v35  ;;  %v454_v36 = vld [vmem:[%s1160_s0 + $0x60] sm:$0xff]  ;;  %v458_v38 = vld [vmem:[%s1160_s0 + $0x90] sm:$0xff] }
  0x14   :  { %v456_v37 = vld [vmem:[%s1160_s0 + $0x1e0] sm:$0xff]  ;;  %455 = vst [vmem:[%s1161_s1 + $0x80] sm:$0xff] %v454_v36  ;;  %459 = vst [vmem:[%s1161_s1 + $0xb0] sm:$0xff] %v458_v38  ;;  %v460_v39 = vld [vmem:[%s1160_s0 + $0x210] sm:$0xff] }
  0x15   :  { %457 = vst [vmem:[%s1161_s1 + $0x200] sm:$0xff] %v456_v37  ;;  %v462_v40 = vld [vmem:[%s1160_s0 + $0xc0] sm:$0xff]  ;;  %461 = vst [vmem:[%s1161_s1 + $0x230] sm:$0xff] %v460_v39  ;;  %v466_v42 = vld [vmem:[%s1160_s0 + $0xf0] sm:$0xff] }
  0x16   :  { %v464_v41 = vld [vmem:[%s1160_s0 + $0x240] sm:$0xff]  ;;  %463 = vst [vmem:[%s1161_s1 + $0xe0] sm:$0xff] %v462_v40  ;;  %v468_v43 = vld [vmem:[%s1160_s0 + $0x270] sm:$0xff]  ;;  %467 = vst [vmem:[%s1161_s1 + $0x110] sm:$0xff] %v466_v42 }
  0x17   :  { %465 = vst [vmem:[%s1161_s1 + $0x260] sm:$0xff] %v464_v41  ;;  %v470_v44 = vld [vmem:[%s1160_s0 + $0x120] sm:$0xff]  ;;  %469 = vst [vmem:[%s1161_s1 + $0x290] sm:$0xff] %v468_v43  ;;  %v474_v46 = vld [vmem:[%s1160_s0 + $0x150] sm:$0xff] }
  0x18   :  { %471 = vst [vmem:[%s1161_s1 + $0x140] sm:$0xff] %v470_v44  ;;  %v472_v45 = vld [vmem:[%s1160_s0 + $0x2a0] sm:$0xff]  ;;  %v476_v47 = vld [vmem:[%s1160_s0 + $0x2d0] sm:$0xff]  ;;  %475 = vst [vmem:[%s1161_s1 + $0x170] sm:$0xff] %v474_v46 }
  0x19   :  { %473 = vst [vmem:[%s1161_s1 + $0x2c0] sm:$0xff] %v472_v45  ;;  %477 = vst [vmem:[%s1161_s1 + $0x2f0] sm:$0xff] %v476_v47  ;;  %v480_v49 = vld [vmem:[%s1160_s0 + $0x1a8] sm:$0xff]  ;;  %v482_v50 = vld [vmem:[%s1160_s0 + $0x58] sm:$0xff] }
  0x1a   :  { %479 = vst [vmem:[%s1161_s1 + $0x8] sm:$0xff] %v478_v48  ;;  %481 = vst [vmem:[%s1161_s1 + $0x188] sm:$0xff] %v480_v49  ;;  %v484_v51 = vld [vmem:[%s1160_s0 + $0x1d8] sm:$0xff]  ;;  %v486_v52 = vld [vmem:[%s1160_s0 + $0x88] sm:$0xff] }
  0x1b   :  { %483 = vst [vmem:[%s1161_s1 + $0x38] sm:$0xff] %v482_v50  ;;  %v488_v53 = vld [vmem:[%s1160_s0 + $0x208] sm:$0xff]  ;;  %485 = vst [vmem:[%s1161_s1 + $0x1b8] sm:$0xff] %v484_v51  ;;  %v490_v54 = vld [vmem:[%s1160_s0 + $0xb8] sm:$0xff] }
  0x1c   :  { %487 = vst [vmem:[%s1161_s1 + $0x68] sm:$0xff] %v486_v52  ;;  %489 = vst [vmem:[%s1161_s1 + $0x1e8] sm:$0xff] %v488_v53  ;;  %v492_v55 = vld [vmem:[%s1160_s0 + $0x238] sm:$0xff]  ;;  %v494_v56 = vld [vmem:[%s1160_s0 + $0xe8] sm:$0xff] }
  0x1d   :  { %491 = vst [vmem:[%s1161_s1 + $0x98] sm:$0xff] %v490_v54  ;;  %493 = vst [vmem:[%s1161_s1 + $0x218] sm:$0xff] %v492_v55  ;;  %v496_v57 = vld [vmem:[%s1160_s0 + $0x268] sm:$0xff]  ;;  %v498_v58 = vld [vmem:[%s1160_s0 + $0x118] sm:$0xff] }
  0x1e   :  { %495 = vst [vmem:[%s1161_s1 + $0xc8] sm:$0xff] %v494_v56  ;;  %v500_v59 = vld [vmem:[%s1160_s0 + $0x298] sm:$0xff]  ;;  %497 = vst [vmem:[%s1161_s1 + $0x248] sm:$0xff] %v496_v57  ;;  %v502_v60 = vld [vmem:[%s1160_s0 + $0x148] sm:$0xff] }
  0x1f   :  { %499 = vst [vmem:[%s1161_s1 + $0xf8] sm:$0xff] %v498_v58  ;;  %501 = vst [vmem:[%s1161_s1 + $0x278] sm:$0xff] %v500_v59  ;;  %v504_v61 = vld [vmem:[%s1160_s0 + $0x2c8] sm:$0xff]  ;;  %v506_v62 = vld [vmem:[%s1160_s0 + $0x178] sm:$0xff] }
  0x20   :  { %503 = vst [vmem:[%s1161_s1 + $0x128] sm:$0xff] %v502_v60  ;;  %505 = vst [vmem:[%s1161_s1 + $0x2a8] sm:$0xff] %v504_v61  ;;  %v508_v63 = vld [vmem:[%s1160_s0 + $0x2f8] sm:$0xff]  ;;  %v514_v2 = vld [vmem:[%s1160_s0 + $0x48] sm:$0xff] }
  0x21   :  { %507 = vst [vmem:[%s1161_s1 + $0x158] sm:$0xff] %v506_v62  ;;  %v510_v0 = vld [vmem:[%s1160_s0 + $0x18] sm:$0xff]  ;;  %509 = vst [vmem:[%s1161_s1 + $0x2d8] sm:$0xff] %v508_v63  ;;  %v516_v3 = vld [vmem:[%s1160_s0 + $0x1c8] sm:$0xff] }
  0x22   :  { %v512_v1 = vld [vmem:[%s1160_s0 + $0x198] sm:$0xff]  ;;  %511 = vst [vmem:[%s1161_s1 + $0x18] sm:$0xff] %v510_v0  ;;  %515 = vst [vmem:[%s1161_s1 + $0x48] sm:$0xff] %v514_v2  ;;  %v522_v6 = vld [vmem:[%s1160_s0 + $0xa8] sm:$0xff] }
  0x23   :  { %513 = vst [vmem:[%s1161_s1 + $0x198] sm:$0xff] %v512_v1  ;;  %v518_v4 = vld [vmem:[%s1160_s0 + $0x78] sm:$0xff]  ;;  %517 = vst [vmem:[%s1161_s1 + $0x1c8] sm:$0xff] %v516_v3  ;;  %v524_v7 = vld [vmem:[%s1160_s0 + $0x228] sm:$0xff] }
  0x24   :  { %519 = vst [vmem:[%s1161_s1 + $0x78] sm:$0xff] %v518_v4  ;;  %v520_v5 = vld [vmem:[%s1160_s0 + $0x1f8] sm:$0xff]  ;;  %523 = vst [vmem:[%s1161_s1 + $0xa8] sm:$0xff] %v522_v6  ;;  %v530_v10 = vld [vmem:[%s1160_s0 + $0x108] sm:$0xff] }
  0x25   :  { %521 = vst [vmem:[%s1161_s1 + $0x1f8] sm:$0xff] %v520_v5  ;;  %525 = vst [vmem:[%s1161_s1 + $0x228] sm:$0xff] %v524_v7  ;;  %v526_v8 = vld [vmem:[%s1160_s0 + $0xd8] sm:$0xff]  ;;  %v532_v11 = vld [vmem:[%s1160_s0 + $0x288] sm:$0xff] }
  0x26   :  { %v528_v9 = vld [vmem:[%s1160_s0 + $0x258] sm:$0xff]  ;;  %527 = vst [vmem:[%s1161_s1 + $0xd8] sm:$0xff] %v526_v8  ;;  %531 = vst [vmem:[%s1161_s1 + $0x108] sm:$0xff] %v530_v10  ;;  %v538_v14 = vld [vmem:[%s1160_s0 + $0x168] sm:$0xff] }
  0x27   :  { %529 = vst [vmem:[%s1161_s1 + $0x258] sm:$0xff] %v528_v9  ;;  %v534_v12 = vld [vmem:[%s1160_s0 + $0x138] sm:$0xff]  ;;  %533 = vst [vmem:[%s1161_s1 + $0x288] sm:$0xff] %v532_v11  ;;  %v540_v15 = vld [vmem:[%s1160_s0 + $0x2e8] sm:$0xff] }
  0x28   :  { %v536_v13 = vld [vmem:[%s1160_s0 + $0x2b8] sm:$0xff]  ;;  %535 = vst [vmem:[%s1161_s1 + $0x138] sm:$0xff] %v534_v12  ;;  %v542_v16 = vld [vmem:[%s1160_s0 + $0x8] sm:$0xff]  ;;  %539 = vst [vmem:[%s1161_s1 + $0x168] sm:$0xff] %v538_v14 }
  0x29   :  { %537 = vst [vmem:[%s1161_s1 + $0x2b8] sm:$0xff] %v536_v13  ;;  %541 = vst [vmem:[%s1161_s1 + $0x2e8] sm:$0xff] %v540_v15  ;;  %v544_v17 = vld [vmem:[%s1160_s0 + $0x188] sm:$0xff]  ;;  %v546_v18 = vld [vmem:[%s1160_s0 + $0x38] sm:$0xff] }
  0x2a   :  { %543 = vst [vmem:[%s1161_s1 + $0x28] sm:$0xff] %v542_v16  ;;  %v548_v19 = vld [vmem:[%s1160_s0 + $0x1b8] sm:$0xff]  ;;  %545 = vst [vmem:[%s1161_s1 + $0x1a8] sm:$0xff] %v544_v17  ;;  %v550_v20 = vld [vmem:[%s1160_s0 + $0x68] sm:$0xff] }
  0x2b   :  { %547 = vst [vmem:[%s1161_s1 + $0x58] sm:$0xff] %v546_v18  ;;  %549 = vst [vmem:[%s1161_s1 + $0x1d8] sm:$0xff] %v548_v19  ;;  %v552_v21 = vld [vmem:[%s1160_s0 + $0x1e8] sm:$0xff]  ;;  %v554_v22 = vld [vmem:[%s1160_s0 + $0x98] sm:$0xff] }
  0x2c   :  { %551 = vst [vmem:[%s1161_s1 + $0x88] sm:$0xff] %v550_v20  ;;  %553 = vst [vmem:[%s1161_s1 + $0x208] sm:$0xff] %v552_v21  ;;  %v556_v23 = vld [vmem:[%s1160_s0 + $0x218] sm:$0xff]  ;;  %v558_v24 = vld [vmem:[%s1160_s0 + $0xc8] sm:$0xff] }
  0x2d   :  { %555 = vst [vmem:[%s1161_s1 + $0xb8] sm:$0xff] %v554_v22  ;;  %v560_v25 = vld [vmem:[%s1160_s0 + $0x248] sm:$0xff]  ;;  %557 = vst [vmem:[%s1161_s1 + $0x238] sm:$0xff] %v556_v23  ;;  %v562_v26 = vld [vmem:[%s1160_s0 + $0xf8] sm:$0xff] }
  0x2e   :  { %559 = vst [vmem:[%s1161_s1 + $0xe8] sm:$0xff] %v558_v24  ;;  %561 = vst [vmem:[%s1161_s1 + $0x268] sm:$0xff] %v560_v25  ;;  %v564_v27 = vld [vmem:[%s1160_s0 + $0x278] sm:$0xff]  ;;  %v566_v28 = vld [vmem:[%s1160_s0 + $0x128] sm:$0xff] }
  0x2f   :  { %563 = vst [vmem:[%s1161_s1 + $0x118] sm:$0xff] %v562_v26  ;;  %565 = vst [vmem:[%s1161_s1 + $0x298] sm:$0xff] %v564_v27  ;;  %v568_v29 = vld [vmem:[%s1160_s0 + $0x2a8] sm:$0xff]  ;;  %v570_v30 = vld [vmem:[%s1160_s0 + $0x158] sm:$0xff] }
  0x30   :  { %567 = vst [vmem:[%s1161_s1 + $0x148] sm:$0xff] %v566_v28  ;;  %v572_v31 = vld [vmem:[%s1160_s0 + $0x2d8] sm:$0xff]  ;;  %569 = vst [vmem:[%s1161_s1 + $0x2c8] sm:$0xff] %v568_v29 }
  0x31   :  { %571 = vst [vmem:[%s1161_s1 + $0x178] sm:$0xff] %v570_v30  ;;  %573 = vst [vmem:[%s1161_s1 + $0x2f8] sm:$0xff] %v572_v31 }

</bundles_post_ra>
